<compile_context>
chip_gen: v7x
topology: tpu7x:2x2x1
jax: 0.10.0
libtpu: 0.0.40
codegen_flags: <defaults>
</compile_context>

<pallas_src>
import functools

import numpy as np
import jax
import jax.numpy as jnp
from jax import lax
from jax.experimental import pallas as pl
from jax.experimental.pallas import tpu as pltpu


def _round_up(v, m):
    return ((v + m - 1) // m) * m


def _causal_deconv1d_kernel(x_ref, w_ref, b_ref, o_ref, stack_ref, carry_ref, *, K):
    """One (batch, time-tile) block of the zero-stuffed causal deconvolution.

    x_ref     : (1, C_in_p, TILE) current time tile of the zero-stuffed input x_up.
    w_ref     : (C_out, K * C_in_p) pre-blocked weights.
    b_ref     : (C_out, 1) bias.
    o_ref     : (1, C_out, TILE) output tile (already in the final NCL layout).
    stack_ref : (K * C_in_p, TILE) VMEM scratch for the shifted input stack.
    carry_ref : (C_in_p, max(K-1, 1)) VMEM scratch carrying the causal halo
                (last K-1 x_up columns of the previous time tile).
    """
    t = pl.program_id(1)
    _, c_in_p, tile = x_ref.shape
    halo = K - 1

    # Tile 0 of every batch: the signal is zero before t=0, so the halo is zeros.
    if halo > 0:
        @pl.when(t == 0)
        def _zero_carry():
            carry_ref[...] = jnp.zeros_like(carry_ref)

    # X_stack[k*C_in_p + ci, u] = x_up[ci, u_abs - k]; built with static-slice ref stores
    # only.  Halo columns come from the carry written by the previous time tile.
    for k in range(K):
        r0, r1 = k * c_in_p, (k + 1) * c_in_p
        if k > 0:
            stack_ref[r0:r1, :k] = carry_ref[:, halo - k:]
        stack_ref[r0:r1, k:] = x_ref[0, :, :tile - k]

    # Save this tile's tail for the next time tile (carry was read above first).
    if halo > 0:
        carry_ref[...] = x_ref[0, :, tile - halo:]

    # Single fused MXU matmul over all taps, bias added once, then one full-width
    # lane-dense store of the whole (C_out, TILE) tile.
    acc = jnp.dot(w_ref[...], stack_ref[...], preferred_element_type=jnp.float32)
    acc = acc + b_ref[...]
    o_ref[0] = acc.astype(o_ref.dtype)


def causal_deconv1d(x, weight, bias, stride, *, max_tile=None):
    """CausalDeConv1d forward.

    x      : (N, C_in, L)  float input, PyTorch NCL layout.
    weight : (C_in, C_out, K)  nn.ConvTranspose1d weight layout.
    bias   : (C_out,)
    Returns (N, C_out, L_out) with L_out = (L-1)*stride + min(K, stride).
    """
    N, C_in, L = x.shape
    _, C_out, K = weight.shape
    L_out = (L - 1) * stride + min(K, stride)          # length after causal trim

    C_in_p = _round_up(C_in, 8)                        # sublane-aligned channel count

    # Output-time tiling: lane-dense tiles (multiple of 128), sized from a VMEM budget
    # (stack + double-buffered input + double-buffered output), tile count balanced so
    # padding waste per tile stays < 128 columns.
    rows = (K + 2) * C_in_p + 2 * C_out
    cap = (8 * 1024 * 1024) // (4 * rows)
    cap = max(128, min(2048, (cap // 128) * 128))
    if max_tile is not None:
        cap = min(cap, max(128, (max_tile // 128) * 128))
    num_tiles = -(-L_out // cap)
    TILE = _round_up(-(-L_out // num_tiles), 128)
    L_pad = TILE * num_tiles
    assert K - 1 <= TILE, "kernel_size must fit within one time tile"

    # Zero-stuffed, channel-padded input: x_up[n, ci, l*stride] = x[n, ci, l], else 0.
    core_len = (L - 1) * stride + 1
    xf = x.astype(jnp.float32)
    x_up = lax.pad(xf, jnp.array(0.0, jnp.float32),
                   ((0, 0, 0),
                    (0, C_in_p - C_in, 0),
                    (0, L_pad - core_len, stride - 1)))          # (N, C_in_p, L_pad)

    # Pre-blocked weight: W_mat[c, k*C_in_p + ci] = weight[ci, c, k] (zeros for padded ci).
    w_t = jnp.transpose(weight.astype(jnp.float32), (1, 2, 0))   # (C_out, K, C_in)
    w_t = jnp.pad(w_t, ((0, 0), (0, 0), (0, C_in_p - C_in)))
    w_mat = w_t.reshape(C_out, K * C_in_p)
    b2 = bias.astype(jnp.float32).reshape(C_out, 1)

    kernel = functools.partial(_causal_deconv1d_kernel, K=K)
    flops = 2 * N * L_pad * K * C_in_p * C_out
    bytes_accessed = 4 * (N * C_in_p * L_pad                     # x_up read once
                          + C_out * K * C_in_p + C_out           # weights + bias
                          + N * C_out * L_pad)                   # output

    out = pl.pallas_call(
        kernel,
        out_shape=jax.ShapeDtypeStruct((N, C_out, L_pad), jnp.float32),
        grid_spec=pltpu.PrefetchScalarGridSpec(
            num_scalar_prefetch=0,
            grid=(N, num_tiles),
            in_specs=[
                pl.BlockSpec((1, C_in_p, TILE), lambda n, t: (n, 0, t)),      # x_up tile
                pl.BlockSpec((C_out, K * C_in_p), lambda n, t: (0, 0)),       # blocked weights
                pl.BlockSpec((C_out, 1), lambda n, t: (0, 0)),                # bias
            ],
            out_specs=pl.BlockSpec((1, C_out, TILE), lambda n, t: (n, 0, t)),
            scratch_shapes=[pltpu.VMEM((K * C_in_p, TILE), jnp.float32),
                            pltpu.VMEM((C_in_p, max(K - 1, 1)), jnp.float32)],
        ),
        compiler_params=pltpu.CompilerParams(
            dimension_semantics=("parallel", "arbitrary")),
        cost_estimate=pl.CostEstimate(flops=flops, transcendentals=0,
                                      bytes_accessed=bytes_accessed),
    )(x_up, w_mat, b2)

    return out[:, :, :L_out]


def _ref_causal_deconv1d(x, w, b, stride):
    """NumPy reference: nn.ConvTranspose1d + causal trim (PyTorch semantics)."""
    x = np.asarray(x, np.float32)
    w = np.asarray(w, np.float32)
    b = np.asarray(b, np.float32)
    N, C_in, L = x.shape
    _, C_out, K = w.shape
    L_full = (L - 1) * stride + K
    y = np.zeros((N, C_out, L_full), np.float32) + b[None, :, None]
    for n in range(N):
        for l in range(L):
            for k in range(K):
                y[n, :, l * stride + k] += x[n, :, l] @ w[:, :, k]
    last_n = K - stride
    return y[:, :, :-last_n] if last_n > 0 else y


if __name__ == "__main__":
    def run_case(key, N, C_in, C_out, K, stride, L, max_tile=None):
        kx, kw, kb = jax.random.split(key, 3)
        x = jax.random.normal(kx, (N, C_in, L), jnp.float32)            # NCL, like PyTorch
        w = jax.random.normal(kw, (C_in, C_out, K), jnp.float32) * 0.1  # ConvTranspose1d weight
        b = jax.random.normal(kb, (C_out,), jnp.float32) * 0.1
        y = jax.block_until_ready(causal_deconv1d(x, w, b, stride, max_tile=max_tile))
        y_ref = _ref_causal_deconv1d(x, w, b, stride)
        assert y.shape == y_ref.shape, (y.shape, y_ref.shape)
        np.testing.assert_allclose(np.asarray(y), y_ref, rtol=1e-5, atol=1e-5)

    k1, k2, k3, k4 = jax.random.split(jax.random.PRNGKey(0), 4)
    # Module config: in=4, out=8, kernel=4, dilation=1 (unused by the module), stride=2.
    run_case(k1, N=2, C_in=4, C_out=8, K=4, stride=2, L=16)
    # K == stride -> no-trim branch of the module.
    run_case(k2, N=2, C_in=4, C_out=8, K=2, stride=2, L=8)
    # K < stride -> bias-only output positions between taps.
    run_case(k3, N=2, C_in=4, C_out=8, K=2, stride=3, L=8)
    # Multi-tile time axis (forced small tile) -> exercises the VMEM halo carry.
    run_case(k4, N=2, C_in=4, C_out=8, K=4, stride=2, L=200, max_tile=128)
    print("KERNEL_OK")
</pallas_src>

<mosaic_0001>
module attributes {stable_mosaic.version = 11 : i64} {
  func.func @_causal_deconv1d_kernel(%arg0: i32, %arg1: i32, %arg2: memref<1x8x128xf32, #tpu.memory_space<vmem>>, %arg3: memref<8x32xf32, #tpu.memory_space<vmem>>, %arg4: memref<8x1xf32, #tpu.memory_space<vmem>>, %arg5: memref<1x8x128xf32, #tpu.memory_space<vmem>>, %arg6: memref<32x128xf32, #tpu.memory_space<vmem>>, %arg7: memref<8x3xf32, #tpu.memory_space<vmem>>) attributes {dimension_semantics = [#tpu.dimension_semantics<parallel>, #tpu.dimension_semantics<arbitrary>], iteration_bounds = array<i64: 2, 1>, scalar_prefetch = 0 : i64, scratch_operands = 2 : i64, tpu.core_type = #tpu.core_type<tc>, window_params = [{transform_indices = @transform_0, window_bounds = array<i64: 1, 8, 128>}, {pipeline_mode = #tpu.pipeline_mode<synchronous>, transform_indices = @transform_1, window_bounds = array<i64: 8, 32>}, {pipeline_mode = #tpu.pipeline_mode<synchronous>, transform_indices = @transform_2, window_bounds = array<i64: 8, 1>}, {transform_indices = @transform_3, window_bounds = array<i64: 1, 8, 128>}]} {
    %c0_i32 = arith.constant 0 : i32
    %0 = arith.cmpi eq, %arg1, %c0_i32 : i32
    %1 = arith.extui %0 : i1 to i32
    %c0_i32_0 = arith.constant 0 : i32
    %2 = arith.cmpi ne, %1, %c0_i32_0 : i32
    scf.if %2 {
      %cst_39 = arith.constant 0.000000e+00 : f32
      %33 = vector.broadcast %cst_39 : f32 to vector<8x3xf32>
      %c0_40 = arith.constant 0 : index
      %c0_41 = arith.constant 0 : index
      %34 = vector.load %arg7[%c0_40, %c0_41] : memref<8x3xf32, #tpu.memory_space<vmem>>, vector<8x3xf32>
      tpu.vector_store %arg7[%c0_40, %c0_41], %33 {strides = array<i32>} : memref<8x3xf32, #tpu.memory_space<vmem>>, vector<8x3xf32>,
    } else {
    }
    %c0 = arith.constant 0 : index
    %c0_1 = arith.constant 0 : index
    %c0_2 = arith.constant 0 : index
    %3 = vector.load %arg2[%c0, %c0_1, %c0_2] : memref<1x8x128xf32, #tpu.memory_space<vmem>>, vector<1x8x128xf32>
    %4 = vector.shape_cast %3 : vector<1x8x128xf32> to vector<8x128xf32>
    %c0_3 = arith.constant 0 : index
    %c0_4 = arith.constant 0 : index
    %5 = vector.load %arg6[%c0_3, %c0_4] : memref<32x128xf32, #tpu.memory_space<vmem>>, vector<8x128xf32>
    tpu.vector_store %arg6[%c0_3, %c0_4], %4 {strides = array<i32>} : memref<32x128xf32, #tpu.memory_space<vmem>>, vector<8x128xf32>,
    %c0_5 = arith.constant 0 : index
    %c2 = arith.constant 2 : index
    %6 = vector.load %arg7[%c0_5, %c2] : memref<8x3xf32, #tpu.memory_space<vmem>>, vector<8x1xf32>
    %c8 = arith.constant 8 : index
    %c0_6 = arith.constant 0 : index
    %7 = vector.load %arg6[%c8, %c0_6] : memref<32x128xf32, #tpu.memory_space<vmem>>, vector<8x1xf32>
    tpu.vector_store %arg6[%c8, %c0_6], %6 {strides = array<i32>} : memref<32x128xf32, #tpu.memory_space<vmem>>, vector<8x1xf32>,
    %c0_7 = arith.constant 0 : index
    %c0_8 = arith.constant 0 : index
    %c0_9 = arith.constant 0 : index
    %8 = vector.load %arg2[%c0_7, %c0_8, %c0_9] : memref<1x8x128xf32, #tpu.memory_space<vmem>>, vector<1x8x127xf32>
    %9 = vector.shape_cast %8 : vector<1x8x127xf32> to vector<8x127xf32>
    %c8_10 = arith.constant 8 : index
    %c1 = arith.constant 1 : index
    %10 = vector.load %arg6[%c8_10, %c1] : memref<32x128xf32, #tpu.memory_space<vmem>>, vector<8x127xf32>
    tpu.vector_store %arg6[%c8_10, %c1], %9 {strides = array<i32>} : memref<32x128xf32, #tpu.memory_space<vmem>>, vector<8x127xf32>,
    %c0_11 = arith.constant 0 : index
    %c1_12 = arith.constant 1 : index
    %11 = vector.load %arg7[%c0_11, %c1_12] : memref<8x3xf32, #tpu.memory_space<vmem>>, vector<8x2xf32>
    %c16 = arith.constant 16 : index
    %c0_13 = arith.constant 0 : index
    %12 = vector.load %arg6[%c16, %c0_13] : memref<32x128xf32, #tpu.memory_space<vmem>>, vector<8x2xf32>
    tpu.vector_store %arg6[%c16, %c0_13], %11 {strides = array<i32>} : memref<32x128xf32, #tpu.memory_space<vmem>>, vector<8x2xf32>,
    %c0_14 = arith.constant 0 : index
    %c0_15 = arith.constant 0 : index
    %c0_16 = arith.constant 0 : index
    %13 = vector.load %arg2[%c0_14, %c0_15, %c0_16] : memref<1x8x128xf32, #tpu.memory_space<vmem>>, vector<1x8x126xf32>
    %14 = vector.shape_cast %13 : vector<1x8x126xf32> to vector<8x126xf32>
    %c16_17 = arith.constant 16 : index
    %c2_18 = arith.constant 2 : index
    %15 = vector.load %arg6[%c16_17, %c2_18] : memref<32x128xf32, #tpu.memory_space<vmem>>, vector<8x126xf32>
    tpu.vector_store %arg6[%c16_17, %c2_18], %14 {strides = array<i32>} : memref<32x128xf32, #tpu.memory_space<vmem>>, vector<8x126xf32>,
    %c0_19 = arith.constant 0 : index
    %c0_20 = arith.constant 0 : index
    %16 = vector.load %arg7[%c0_19, %c0_20] : memref<8x3xf32, #tpu.memory_space<vmem>>, vector<8x3xf32>
    %c24 = arith.constant 24 : index
    %c0_21 = arith.constant 0 : index
    %17 = vector.load %arg6[%c24, %c0_21] : memref<32x128xf32, #tpu.memory_space<vmem>>, vector<8x3xf32>
    tpu.vector_store %arg6[%c24, %c0_21], %16 {strides = array<i32>} : memref<32x128xf32, #tpu.memory_space<vmem>>, vector<8x3xf32>,
    %c0_22 = arith.constant 0 : index
    %c0_23 = arith.constant 0 : index
    %c0_24 = arith.constant 0 : index
    %18 = vector.load %arg2[%c0_22, %c0_23, %c0_24] : memref<1x8x128xf32, #tpu.memory_space<vmem>>, vector<1x8x125xf32>
    %19 = vector.shape_cast %18 : vector<1x8x125xf32> to vector<8x125xf32>
    %c24_25 = arith.constant 24 : index
    %c3 = arith.constant 3 : index
    %20 = vector.load %arg6[%c24_25, %c3] : memref<32x128xf32, #tpu.memory_space<vmem>>, vector<8x125xf32>
    tpu.vector_store %arg6[%c24_25, %c3], %19 {strides = array<i32>} : memref<32x128xf32, #tpu.memory_space<vmem>>, vector<8x125xf32>,
    %c0_26 = arith.constant 0 : index
    %c0_27 = arith.constant 0 : index
    %c125 = arith.constant 125 : index
    %21 = vector.load %arg2[%c0_26, %c0_27, %c125] : memref<1x8x128xf32, #tpu.memory_space<vmem>>, vector<1x8x3xf32>
    %22 = vector.shape_cast %21 : vector<1x8x3xf32> to vector<8x3xf32>
    %c0_28 = arith.constant 0 : index
    %c0_29 = arith.constant 0 : index
    %23 = vector.load %arg7[%c0_28, %c0_29] : memref<8x3xf32, #tpu.memory_space<vmem>>, vector<8x3xf32>
    tpu.vector_store %arg7[%c0_28, %c0_29], %22 {strides = array<i32>} : memref<8x3xf32, #tpu.memory_space<vmem>>, vector<8x3xf32>,
    %c0_30 = arith.constant 0 : index
    %c0_31 = arith.constant 0 : index
    %24 = vector.load %arg3[%c0_30, %c0_31] : memref<8x32xf32, #tpu.memory_space<vmem>>, vector<8x32xf32>
    %c0_32 = arith.constant 0 : index
    %c0_33 = arith.constant 0 : index
    %25 = vector.load %arg6[%c0_32, %c0_33] : memref<32x128xf32, #tpu.memory_space<vmem>>, vector<32x128xf32>
    %cst = arith.constant dense<0.000000e+00> : vector<8x128xf32>
    %26 = tpu.matmul %24, %25, %cst {dimension_numbers = #tpu.dot_dimension_numbers<[1], [0], [0], [1], [0, 0, 1, 1], [], []>} : vector<8x32xf32>, vector<32x128xf32>, vector<8x128xf32> -> vector<8x128xf32>
    %c0_34 = arith.constant 0 : index
    %c0_35 = arith.constant 0 : index
    %27 = vector.load %arg4[%c0_34, %c0_35] : memref<8x1xf32, #tpu.memory_space<vmem>>, vector<8x1xf32>
    %28 = vector.broadcast %27 : vector<8x1xf32> to vector<8x128xf32>
    %29 = arith.addf %26, %28 : vector<8x128xf32>
    %c0_36 = arith.constant 0 : index
    %c0_37 = arith.constant 0 : index
    %c0_38 = arith.constant 0 : index
    %30 = vector.load %arg5[%c0_36, %c0_37, %c0_38] : memref<1x8x128xf32, #tpu.memory_space<vmem>>, vector<1x8x128xf32>
    %31 = vector.shape_cast %30 : vector<1x8x128xf32> to vector<8x128xf32>
    %32 = vector.shape_cast %29 : vector<8x128xf32> to vector<1x8x128xf32>
    tpu.vector_store %arg5[%c0_36, %c0_37, %c0_38], %32 {strides = array<i32>} : memref<1x8x128xf32, #tpu.memory_space<vmem>>, vector<1x8x128xf32>,
    return
  }
  func.func @transform_0(%arg0: i32, %arg1: i32) -> (i32, i32, i32) {
    %c0_i32 = arith.constant 0 : i32
    %c0_i32_0 = arith.constant 0 : i32
    return %arg0, %c0_i32, %arg1 : i32, i32, i32
  }
  func.func @transform_1(%arg0: i32, %arg1: i32) -> (i32, i32) {
    %c0_i32 = arith.constant 0 : i32
    %c0_i32_0 = arith.constant 0 : i32
    %c0_i32_1 = arith.constant 0 : i32
    return %c0_i32, %c0_i32_0 : i32, i32
  }
  func.func @transform_2(%arg0: i32, %arg1: i32) -> (i32, i32) {
    %c0_i32 = arith.constant 0 : i32
    %c0_i32_0 = arith.constant 0 : i32
    %c0_i32_1 = arith.constant 0 : i32
    return %c0_i32, %c0_i32_0 : i32, i32
  }
  func.func @transform_3(%arg0: i32, %arg1: i32) -> (i32, i32, i32) {
    %c0_i32 = arith.constant 0 : i32
    %c0_i32_0 = arith.constant 0 : i32
    return %arg0, %c0_i32, %arg1 : i32, i32, i32
  }
}

</mosaic_0001>

<bundles_post_ra>
// kernel: tpu_custom_call.1
= control target key start
LH: loop header
LB: loop body
LE: loop exit
PB: predicated region body
PF: predicated region fallthrough
CT: control target
= control target key end

     0   :  { %8 = vsyncpa [#allocation5], 0  ;;  %s875_s0 = inlined_call_operand.hbm [shape: f32[2,8,128], index: 0, kind: input, shape index: {}]   ;;  %s876_s1 = inlined_call_operand.vmem [shape: f32[8,32], index: 1, kind: input, shape index: {}]   ;;  %s877_s2 = inlined_call_operand.vmem [shape: f32[8,1], index: 2, kind: input, shape index: {}]   ;;  %s878_s3 = inlined_call_operand.hbm [shape: f32[2,8,128], index: 3, kind: output, shape index: {}]  }
   0x1   :  { %10 = vsyncpa [#allocation5 + $0x1], 0 }
   0x2   :  { %11 = vsyncpa [#allocation6], 0 }
   0x3   :  { %13 = vsyncpa [#allocation6 + $0x1], 0  ;;  %s690_s12 = smov 0   ;;  %s692_s13 = smov 0  }
   0x4   :  { %s694_s14 = smov 0   ;;  %s696_s15 = smov 0  }
   0x5   :  { %s698_s16 = smov 0   ;;  %s700_s17 = smov 0  }
   0x6 LB: > { %s436_s18 = sadd.s32 4294967295, %s657_s17   ;;  %s437_s19 = sadd.s32 4294967294, %s657_s17   ;;  %s657_s17 = sphi %s700_s17, %s19_s17   ;;  %s653_s16 = sphi %s698_s16, %s894_s16   ;;  %s649_s15 = sphi %s696_s15, %s893_s15   ;;  %s645_s14 = sphi %s694_s14, %s892_s14   ;;  %s641_s13 = sphi %s692_s13, %s891_s13   ;;  %s637_s12 = sphi %s690_s12, %s890_s12  }
   0x7   : > { %s31_s20 = sadd.s32 1, %s653_s16  ;;  %s40_s21 = sadd.s32 1, %s645_s14 }
   0x8   : > { %p33_p0 = scmp.ge.s32.totalorder %s31_s20, 2  ;;  %p47_p1 = scmp.ne.s32.totalorder %s645_s14, %s641_s13 }
   0x9   : > { %p48_p2 = scmp.eq.s32.totalorder %s657_s17, 0  ;;  %p53_p3 = scmp.ne.s32.totalorder %s641_s13, %s637_s12 }
   0xa   : > { %s896_s20 = smov (%p33_p0, %s31_s20), 0  ;;  %p54_p5 = scmp.eq.s32.totalorder %s436_s18, 0 }
   0xb   : > { %p731_p4 = por %p48_p2, %p47_p1  ;;  %s35_s23 = ssub.s32 %s653_s16, %s896_s20 }
   0xc   : > { %p121_p6 = scmp.eq.s32.totalorder %s436_s18, 1  ;;  %p38_p7 = scmp.eq.s32.totalorder %s35_s23, 0 }
   0xd   : > { %p737_p8 = por %p54_p5, %p53_p3  ;;  %p127_p10 = scmp.eq.s32.totalorder %s437_s19, 1 }
   0xe   : > { %p741_p9 = por %p121_p6, %p47_p1  ;;  %p484_p13 = scmp.lt.s32.totalorder %s657_s17, 2 }
   0xf   : > { %s746_s26 = scalar_select %p38_p7, %s645_s14, %s40_s21  }
  0x10   : > { %s882_s25 = scalar_select %p741_p9, 1, 0 }
  0x11   : > { %p748_p11 = por %p127_p10, %p53_p3  ;;  %s153_s28 = sand.u32 1, %s645_s14  }
  0x12   : > { %s440_s29 = sshll.u32 %s153_s28, 3  ;;  %s441_s30 = sshll.u32 %s653_s16, 7 }
  0x13   : > { %s883_s27 = scalar_select %p748_p11, 1, 0 }
  0x14   : > { %s759_s6 = scalar_lea.hbm %s875_s0, %s441_s30  ;;  %s157_s7 = scalar_lea.vmem [#allocation4], %s440_s29 }
  0x15   : > { %s165_s8 = sshll.u32 %s157_s7, 4  ;;  %p765_p0 = pnand %p484_p13, %p731_p4  ;;  %s761_s8 = int_to_ptr.vmem [resolvable:$true] %s165_s8 }
  0x16   : > { %s154_s10 = scalar_lea.sflag [#allocation5], %s153_s28  ;;  %s545_s11 = scalar_lea.hbm %s759_s6, 128 }
  0x17   : > { %p546_p3 = scmp.ne.s32.totalorder %s759_s6, %s545_s11  ;;  %p547_p5 = pneg %p765_p0 }
  0x18   : > { %s550_s21 = scalar_lea.hbm %s875_s0, 256  ;;  %p551_p4 = scmp.lt.u32.totalorder %s759_s6, %s875_s0 }
  0x19   : > { %p548_p6 = pnand %p547_p5, %p546_p3  ;;  %p552_p10 = scmp.lt.u32.totalorder %s550_s21, %s545_s11 }
  0x1a   : > { %p554_p12 = scmp.lt.u32.totalorder %s545_s11, %s759_s6 }
  0x1b   : > { %p549_p7 = pneg %p548_p6  ;;  %p553_p13 = por %p552_p10, %p551_p4 }
  0x1d   : > { %p555_p1 = por %p554_p12, %p553_p13 }
  0x1f   : > { %p556_p2 = pnand %p555_p1, %p549_p7 }
  0x21   : > { %559 = shalt.err (!%p556_p2)
}
  0x22   : > { %s560_s28 = scalar_lea.vmem %s761_s8, 128  ;;  %s659_s29 = smov [#allocation4]  }
  0x23   : > { %p561_p3 = scmp.ne.s32.totalorder %s761_s8, %s560_s28  ;;  %s565_s30 = sshll.u32 %s659_s29, 4  ;;  %s566_s30 = int_to_ptr.vmem [resolvable:$false] %s565_s30 }
  0x24   : > { %s567_s4 = scalar_lea.vmem %s566_s30, 256  ;;  %p568_p9 = scmp.lt.s32.totalorder %s761_s8, %s566_s30 }
  0x25   : > { %p563_p6 = pnand %p561_p3, %p547_p5  ;;  %p569_p4 = scmp.lt.s32.totalorder %s567_s4, %s560_s28 }
  0x27   : > { %p564_p11 = pneg %p563_p6  ;;  %p570_p10 = por %p569_p4, %p568_p9 }
  0x29   : > { %p571_p12 = pnand %p570_p10, %p564_p11 }
  0x2b   : > { %574 = shalt.err (!%p571_p12)
}
  0x2c   : > { %479 = dma.hbm_to_vmem [thread:$0]  (!%p765_p0), %s759_s6, 128, %s761_s8, %s154_s10  }
  0x2d   : > { %p885_p1 = scmp.lt.s32.totalorder %s657_s17, 3  ;;  %p886_p2 = scmp.ge.s32.totalorder %s657_s17, 1 }
  0x2f   : > { %p171_p5 = pnand %p886_p2, %p885_p1 }
  0x30   : > { %s801_s5 = sand.u32 (!%p171_p5), 1, %s641_s13  }
  0x31   : > { %174 = sbr.rel (%p171_p5) target bundleno = 430 (0x1ae), region = 32  ;;  %s443_s7 = sshll.u32 (!%p171_p5), %s801_s5, 3 }
  0x32   : > { %s177_s11 = scalar_lea.sflag (!%p171_p5), [#allocation5], %s801_s5  ;;  %s180_s9 = scalar_lea.vmem (!%p171_p5), [#allocation4], %s443_s7 }
  0x38   : > { %628 = dma.done.wait (%p737_p8), %s177_s11, 128  }
  0x39   : > { %630 = vsyncadd (%p737_p8), %s177_s11, 4294967168  ;;  %vm207_vm0 = vcmask 23552   ;;  %v660_v0 = vmov 0.0   ;;  %v661_v1 = vmov 0.0|0.0   ;;  %v218_v2 = vld [vmem:[%s180_s9] sm:$0xff]  ;;  %s662_s6 = smov 126  }
  0x3a   : > { %208 = vst.msk [vmem:[#allocation3] sm:$0xff] %vm207_vm0, %v660_v0  ;;  %466 = vmatprep.subr.bf16.mxu0 %v661_v1  ;;  %s663_s8 = smov 127   ;;  %s664_s10 = smov 1   ;;  %vm666_vm1 = vmmov 0   ;;  %v260_v4 = vld [vmem:[%s877_s2] sm:$0xff]  ;;  %v668_v5 = vmov 0  }
  0x3b   : > { %s665_s18 = smov 2   ;;  %463 = vmatprep.mubr.msk.f32.mxu0 %vm666_vm1, %v660_v0  ;;  %s667_s24 = smov 3   ;;  %543 = vset.pattern.permute.xlu1 %v668_v5  ;;  %vm216_vm2 = vcmask 7168   ;;  %vm230_vm3 = vcmask 15360   ;;  %vm223_vm4 = vcmask 1047560   ;;  %vm237_vm5 = vcmask 1047568  }
  0x3c   : > { %544 = vset.pattern.permute.xlu0 %v668_v5  ;;  %vm247_vm6 = vcmask 1047576   ;;  %v255_v16 = vld [vmem:[%s876_s1] sm:$0xff]  ;;  %vm266_vm7 = vcmask 261120   ;;  %s447_s28 = sshll.u32 %s649_s15, 7  ;;  %s202_s29 = scalar_lea.vmem [#allocation7], %s443_s7 }
  0x3d   : > { %s356_s30 = sshll.u32 %s202_s29, 4  ;;  %s826_s9 = scalar_lea.hbm %s878_s3, %s447_s28  ;;  %s828_s30 = int_to_ptr.vmem [resolvable:$true] %s356_s30 }
  0x3e   : > { %p887_p9 = scmp.ne.s32.totalorder %s882_s25, 0  ;;  %s669_s15 = smov [#allocation7]  }
  0x3f   : > { %s579_s7 = sshll.u32 %s669_s15, 4  ;;  %s580_s7 = int_to_ptr.vmem [resolvable:$false] %s579_s7 }
  0x40   : > { %p582_p7 = scmp.lt.s32.totalorder %s828_s30, %s580_s7 }
  0x41   : > { %v211_v3 = vld [vmem:[#allocation3] sm:$0xff] }
  0x42   : > { %213 = vrot.lane.b32.xlu0 %v211_v3, %s662_s6  ;;  %227 = vrot.lane.b32.xlu1 %v211_v3, %s663_s8  ;;  %241 = vst.msk [vmem:[#allocation2 + $0x18] sm:$0xff] %vm207_vm0, %v211_v3  ;;  %s342_s6 = scalar_lea.sflag [#allocation6], %s801_s5  ;;  %s575_s8 = scalar_lea.vmem %s828_s30, 128 }
  0x43   : > { %p576_p8 = scmp.ne.s32.totalorder %s828_s30, %s575_s8 }
  0x45   : > { %p577_p11 = pnand %p576_p8, %p887_p9 }
  0x46   : > { %220 = vrot.lane.b32.xlu0 %v218_v2, %s664_s10  ;;  %234 = vrot.lane.b32.xlu1 %v218_v2, %s665_s18  ;;  %s581_s10 = scalar_lea.vmem %s580_s7, 256 }
  0x47   : > { %p578_p0 = pneg %p577_p11  ;;  %p583_p13 = scmp.lt.s32.totalorder %s581_s10, %s575_s8 }
  0x49   : > { %p584_p3 = por %p583_p13, %p582_p7 }
  0x4a   : > { %244 = vrot.lane.b32.xlu0 %v218_v2, %s667_s24  ;;  %263 = vperm.xlu1 %543, %v260_v4  }
  0x4b   : > { %p585_p6 = pnand %p584_p3, %p578_p0 }
  0x4e   : > { %251 = vrot.lane.b32.xlu0 %v218_v2, %s667_s24 }
  0xb4   : > { %v214_v6 = vpop.permute.xlu0 %213  ;;  %v228_v7 = vpop.permute.xlu1 %227 }
  0xb5   : > { %217 = vst.msk [vmem:[#allocation2 + $0x8] sm:$0xff] %vm216_vm2, %v214_v6 }
  0xb6   : > { %231 = vst.msk [vmem:[#allocation2 + $0x10] sm:$0xff] %vm230_vm3, %v228_v7 }
  0xb8   : > { %v221_v8 = vpop.permute.xlu0 %220  ;;  %v235_v9 = vpop.permute.xlu1 %234 }
  0xb9   : > { %224 = vst.msk [vmem:[#allocation2 + $0x8] sm:$0xff] %vm223_vm4, %v221_v8 }
  0xba   : > { %238 = vst.msk [vmem:[#allocation2 + $0x10] sm:$0xff] %vm237_vm5, %v235_v9 }
  0xbc   : > { %v245_v10 = vpop.permute.xlu0 %244 }
  0xbd   : > { %248 = vst.msk [vmem:[#allocation2 + $0x18] sm:$0xff] %vm247_vm6, %v245_v10 }
  0xc0   : > { %v257_v11 = vld [vmem:[#allocation2 + $0x8] sm:$0xff]  ;;  %v252_v17 = vpop.permute.xlu0 %251 }
  0xc1   : > { %v467_v12 = vpack.c.bf16 %v257_v11, %v218_v2  ;;  %v258_v13 = vld [vmem:[#allocation2 + $0x10] sm:$0xff]  ;;  %254 = vst.msk [vmem:[#allocation3] sm:$0xff] %vm207_vm0, %v252_v17 }
  0xc3   : > { %468 = vmatpush3.bf16.msra.mxu0 %v467_v12 }
  0xc4   : > { %469 = vmatprep.subr.bf16.mxu0 %v661_v1  ;;  %v259_v14 = vld [vmem:[#allocation2 + $0x18] sm:$0xff] }
  0xc5   : > { %v470_v15 = vpack.c.bf16 %v259_v14, %v258_v13 }
  0xc7   : > { %471 = vmatpush3.bf16.msra.mxu0 %v470_v15 }
  0xc9   : > { %v264_v18 = vpop.permute.xlu1 %263 }
  0xca   : > { %464 = vmatmul.mubr.msk.f32.vlgmr.msra.gmra.mrb[0].mxu0 %vm266_vm7, %v255_v16 }
 0x19d   : > { %v336_v19 = vpop.f32.mrb[0].mxu0 }
 0x19e   : > { %v337_v20 = vadd.f32 %v336_v19, %v264_v18  ;;  %v465_v21 = vpop.f32.mrb[1].mxu0 }
 0x1a0   : > { %340 = vst [vmem:[%s202_s29] sm:$0xff] %v337_v20 }
 0x1a1   : > { %588 = shalt.err (!%p585_p6)
}
 0x1a2   : > { %s589_s5 = scalar_lea.hbm %s826_s9, 128  ;;  %s593_s19 = scalar_lea.hbm %s878_s3, 256 }
 0x1a3   : > { %p590_p4 = scmp.ne.s32.totalorder %s826_s9, %s589_s5  ;;  %p594_p1 = scmp.lt.u32.totalorder %s826_s9, %s878_s3 }
 0x1a4   : > { %p595_p2 = scmp.lt.u32.totalorder %s593_s19, %s589_s5  ;;  %p597_p8 = scmp.lt.u32.totalorder %s589_s5, %s826_s9 }
 0x1a5   : > { %p591_p10 = pnand %p590_p4, %p887_p9 }
 0x1a6   : > { %p596_p5 = por %p595_p2, %p594_p1 }
 0x1a7   : > { %p592_p12 = pneg %p591_p10 }
 0x1a8   : > { %p598_p11 = por %p597_p8, %p596_p5 }
 0x1aa   : > { %p599_p0 = pnand %p598_p11, %p592_p12 }
 0x1ac   : > { %602 = shalt.err (!%p599_p0)
}
 0x1ad   : > { %474 = dma.vmem_to_hbm [thread:$0]  (%p887_p9), %s828_s30, 128, %s826_s9, %s342_s6  }
 0x1ae PF: > { %s368_s23 = sand.u32 1, %s637_s12   ;;  %p888_p7 = scmp.ne.s32.totalorder %s883_s27, 0 }
 0x1af   : > { %p889_p13 = scmp.ge.s32.totalorder %s657_s17, 2  ;;  %s369_s28 = scalar_lea.sflag [#allocation6], %s368_s23 }
 0x1b1   : > { %p481_p3 = pnand %p889_p13, %p888_p7 }
 0x1b3   : > { %632 = dma.done.wait (!%p481_p3), %s369_s28, 128  }
 0x1b4   : > { %634 = vsyncadd (!%p481_p3), %s369_s28, 4294967168  ;;  %s19_s17 = sadd.s32 1, %s657_s17   ;;  %s890_s12 = smov %s641_s13 }
 0x1b5   : > { %p16_p6 = scmp.ge.s32.totalorder %s19_s17, 4   ;;  %s891_s13 = smov %s645_s14 }
 0x1b6   : > { %s892_s14 = smov %s746_s26  ;;  %s893_s15 = smov %s653_s16 }
 0x1b7   : > { %s894_s16 = smov %s896_s20  ;;  %18 = sbr.rel (!%p16_p6) target bundleno = 6 (0x6), region = 81 }
 0x1be   :  { %374 = vsyncpa [#allocation5], 1 }
 0x1bf   :  { %376 = vsyncpa [#allocation5 + $0x1], 1 }
 0x1c0   :  { %377 = vsyncpa [#allocation6], 1 }
 0x1c1   :  { %379 = vsyncpa [#allocation6 + $0x1], 1 }

</bundles_post_ra>
